<compile_context>
chip_gen: v6e
topology: v6e:2x2x1
jax: 0.10.0
libtpu: 0.0.40
codegen_flags: <defaults>
</compile_context>

<pallas_src>
import jax
import jax.numpy as jnp
from jax.experimental import pallas as pl
from jax.experimental.pallas import tpu as pltpu

_LANES = 128
_SUB = 8


def _round_up(x, m):
    return -(-x // m) * m


def _sublane_granularity(dtype):
    itemsize = jnp.dtype(dtype).itemsize
    return {4: 8, 2: 16, 1: 32}.get(itemsize, 8)


def _hw_config():
    """(tile_bytes, vmem_limit_bytes, row_partitions) for the current TPU gen.

    Defaults are safe everywhere (v7x has the smallest VMEM: 64 MiB per TC,
    and 2 TensorCores per chip).  v5e / v6e get bigger tiles (128 MiB VMEM)
    and a single partition (single TensorCore).
    """
    tile_bytes, vmem_limit, parts = 8 << 20, 48 << 20, 2
    try:
        kind = jax.devices()[0].device_kind.lower()
        if ("v5" in kind) or ("v6" in kind):
            tile_bytes, vmem_limit, parts = 16 << 20, 96 << 20, 1
    except Exception:
        pass
    return tile_bytes, vmem_limit, parts


def _lane_dense(x):
    """Free row-major reshape to a 128-lane-dense layout when possible."""
    r, c = x.shape
    if c % _LANES == 0:
        return x
    if (r * c) % _LANES == 0:
        return x.reshape((r * c) // _LANES, _LANES)
    return x


def _row_blocking(rows, cols, itemsize, tile_bytes, sub, max_parts):
    """Returns (tile_rows, steps, partitions, n_real_blocks)."""
    bytes_per_row = max(1, cols * itemsize)
    if rows * bytes_per_row <= tile_bytes:
        # Whole operand fits in one tile: exact block, no masking needed.
        return rows, 1, 1, 1
    # NOTE: no column tiling -- if a single sub-row slab of a very wide matrix
    # exceeds the budget we raise the vmem limit below instead.
    max_rows = max(sub, (tile_bytes // bytes_per_row) // sub * sub)
    tile = min(max_rows, _round_up(rows, sub))
    nblocks = -(-rows // tile)
    parts = max(1, min(max_parts, nblocks))
    steps = -(-nblocks // parts)
    return tile, steps, parts, nblocks


def _make_pair_kernel(rows, tile, steps, needs_mask, with_s_stats):
    """Partial ||A-B||_F^2 per partition (plus S stats on partition 0)."""
    ssq_lane = 2 if with_s_stats else 0

    def kernel(*refs):
        if with_s_stats:
            s1_ref, s2_ref, a_ref, b_ref, out_ref, acc_ref = refs
        else:
            a_ref, b_ref, out_ref, acc_ref = refs
            s1_ref = s2_ref = None

        p = pl.program_id(0)
        i = pl.program_id(1)
        last = pl.num_programs(1) - 1

        @pl.when(i == 0)
        def _init():
            acc_ref[...] = jnp.zeros_like(acc_ref)
            out_ref[...] = jnp.zeros_like(out_ref)

        d = a_ref[...].astype(jnp.float32) - b_ref[...].astype(jnp.float32)
        if needs_mask:
            # Zero rows past the true extent (ragged last block and clamped
            # duplicate blocks).  `base` uses the UNCLAMPED block index so a
            # duplicated block contributes exactly nothing.
            base = (p * steps + i) * tile
            ridx = base + jax.lax.broadcasted_iota(jnp.int32, d.shape, 0)
            d = jnp.where(ridx < rows, d, 0.0)
        # Sublane-only partial reduce; the cross-lane reduce happens once at
        # the final step (keeps the per-step work to VPU adds on top of DMA).
        acc_ref[...] += jnp.sum(d * d, axis=0, keepdims=True)

        @pl.when(i == last)
        def _store():
            row = jax.lax.broadcasted_iota(jnp.int32, (_SUB, _LANES), 0)
            lane = jax.lax.broadcasted_iota(jnp.int32, (_SUB, _LANES), 1)
            ssq = jnp.sum(acc_ref[...])
            out_ref[...] = jnp.where((row == 0) & (lane == ssq_lane), ssq, 0.0)

        if with_s_stats:
            @pl.when((i == last) & (p == 0))
            def _s_stats():
                s1 = s1_ref[...].astype(jnp.float32)
                s2 = s2_ref[...].astype(jnp.float32)
                ds = s2 - s1
                sloss = jnp.mean(ds * ds)            # torch.mean((s2 - s1) ** 2)
                ssum = jnp.sum(s2) - jnp.sum(s1)     # torch.sum(s2) - torch.sum(s1)
                row = jax.lax.broadcasted_iota(jnp.int32, (_SUB, _LANES), 0)
                lane = jax.lax.broadcasted_iota(jnp.int32, (_SUB, _LANES), 1)
                out_ref[...] += jnp.where(
                    (row == 0) & (lane == 0), sloss,
                    jnp.where((row == 0) & (lane == 1), ssum, 0.0))

    return kernel


def _tiled_pair_call(a, b, *, with_s_stats=False, extra=(), extra_specs=(),
                     tile_bytes=None, max_parts=None):
    rows, cols = a.shape
    itemsize = jnp.dtype(a.dtype).itemsize
    hw_tile, hw_limit, hw_parts = _hw_config()
    tile_bytes = hw_tile if tile_bytes is None else tile_bytes
    max_parts = hw_parts if max_parts is None else max_parts
    sub = _sublane_granularity(a.dtype)

    tile, steps, parts, nblocks = _row_blocking(
        rows, cols, itemsize, tile_bytes, sub, max_parts)
    needs_mask = parts * steps * tile != rows
    needs_clamp = parts * steps > nblocks

    if needs_clamp:
        def tile_idx(p, i):
            return (jnp.minimum(p * steps + i, nblocks - 1), 0)
    else:
        def tile_idx(p, i):
            return (p * steps + i, 0)

    tile_spec = pl.BlockSpec((tile, cols), tile_idx)
    out_spec = pl.BlockSpec((_SUB, _LANES), lambda p, i: (p, 0))

    kernel = _make_pair_kernel(rows, tile, steps, needs_mask, with_s_stats)

    extra_bytes = sum(int(x.size) * jnp.dtype(x.dtype).itemsize for x in extra)
    out_bytes = parts * _SUB * _LANES * 4
    cost = pl.CostEstimate(
        flops=int(3 * rows * cols + 8 * sum(int(x.size) for x in extra)),
        transcendentals=0,
        bytes_accessed=int(2 * rows * cols * itemsize + extra_bytes + out_bytes),
    )

    # 2 operands x 2 pipeline buffers + accumulator + output + resident extras.
    need = (4 * tile * cols * itemsize + cols * 4 + out_bytes
            + 2 * extra_bytes + (2 << 20))
    vmem_limit = int(max(hw_limit, need))

    return pl.pallas_call(
        kernel,
        out_shape=jax.ShapeDtypeStruct((parts * _SUB, _LANES), jnp.float32),
        grid=(parts, steps),
        in_specs=list(extra_specs) + [tile_spec, tile_spec],
        out_specs=out_spec,
        scratch_shapes=[pltpu.VMEM((1, cols), jnp.float32)],
        compiler_params=pltpu.CompilerParams(
            dimension_semantics=("parallel", "arbitrary"),
            vmem_limit_bytes=vmem_limit,
        ),
        cost_estimate=cost,
    )(*extra, a, b)


def svd_loss(gen, tar, *, _tile_bytes=None, _max_parts=None):
    """Returns (sloss, sloss_sum, uloss, vloss); PyTorch forward returns sloss."""
    # TODO(synk): torch.svd (the factorization itself) has no Pallas
    # equivalent -- computed with jnp.linalg.svd; all loss math is in Pallas.
    u1, s1, v1h = jnp.linalg.svd(gen, full_matrices=False)
    u2, s2, v2h = jnp.linalg.svd(tar, full_matrices=False)
    # ||V1 - V2||_F == ||V1^H - V2^H||_F  ->  no transposes needed.

    k = s1.shape[-1]
    s1_2d = s1.reshape(1, k)
    s2_2d = s2.reshape(1, k)
    s_spec = pl.BlockSpec((1, k), lambda p, i: (0, 0))   # resident, DMA'd once

    out_u = _tiled_pair_call(_lane_dense(u1), _lane_dense(u2),
                             with_s_stats=True,
                             extra=(s1_2d, s2_2d), extra_specs=(s_spec, s_spec),
                             tile_bytes=_tile_bytes, max_parts=_max_parts)
    out_v = _tiled_pair_call(_lane_dense(v1h), _lane_dense(v2h),
                             tile_bytes=_tile_bytes, max_parts=_max_parts)

    sloss = out_u[0, 0]
    sloss_sum = out_u[0, 1]
    # Combine per-partition partial sums of squares (tiny scalar math).
    uloss = jnp.sqrt(jnp.sum(out_u[:, 2]))
    vloss = jnp.sqrt(jnp.sum(out_v[:, 0]))
    return sloss, sloss_sum, uloss, vloss


def _ref_losses(g, t):
    u1, s1, v1h = jnp.linalg.svd(g, full_matrices=False)
    u2, s2, v2h = jnp.linalg.svd(t, full_matrices=False)
    return (jnp.mean((s2 - s1) ** 2),
            jnp.sum(s2) - jnp.sum(s1),
            jnp.sqrt(jnp.sum((u1 - u2) ** 2)),
            jnp.sqrt(jnp.sum((v1h - v2h) ** 2)))


if __name__ == "__main__":
    key = jax.random.PRNGKey(0)
    k1, k2, k3, k4 = jax.random.split(key, 4)

    # Primary example (matches the module spec: two 2-D matrices).
    gen = jax.random.normal(k1, (16, 32), dtype=jnp.float32)
    tar = jax.random.normal(k2, (16, 32), dtype=jnp.float32)
    outs = svd_loss(gen, tar)
    jax.block_until_ready(outs)
    refs = _ref_losses(gen, tar)
    for o, r in zip(outs, refs):
        assert jnp.allclose(o, r, rtol=1e-5, atol=1e-5), (o, r)

    # Exercise the multi-block / 2-partition / clamped+masked tail path by
    # forcing a tiny tile budget (correctness of the no-pad masking).
    gen2 = jax.random.normal(k3, (20, 36), dtype=jnp.float32)
    tar2 = jax.random.normal(k4, (20, 36), dtype=jnp.float32)
    outs2 = svd_loss(gen2, tar2, _tile_bytes=1024, _max_parts=2)
    jax.block_until_ready(outs2)
    refs2 = _ref_losses(gen2, tar2)
    for o, r in zip(outs2, refs2):
        assert jnp.allclose(o, r, rtol=1e-4, atol=1e-4), (o, r)

    print("KERNEL_OK")
</pallas_src>

<mosaic_0001>
module attributes {stable_mosaic.version = 11 : i64} {
  func.func @kernel(%arg0: i32, %arg1: i32, %arg2: memref<1x16xf32, #tpu.memory_space<vmem>>, %arg3: memref<1x16xf32, #tpu.memory_space<vmem>>, %arg4: memref<2x128xf32, #tpu.memory_space<vmem>>, %arg5: memref<2x128xf32, #tpu.memory_space<vmem>>, %arg6: memref<8x128xf32, #tpu.memory_space<vmem>>, %arg7: memref<1x128xf32, #tpu.memory_space<vmem>>) attributes {dimension_semantics = [#tpu.dimension_semantics<parallel>, #tpu.dimension_semantics<arbitrary>], iteration_bounds = array<i64: 1, 1>, scalar_prefetch = 0 : i64, scratch_operands = 1 : i64, tpu.core_type = #tpu.core_type<tc>, window_params = [{pipeline_mode = #tpu.pipeline_mode<synchronous>, transform_indices = @transform_0, window_bounds = array<i64: 1, 16>}, {pipeline_mode = #tpu.pipeline_mode<synchronous>, transform_indices = @transform_1, window_bounds = array<i64: 1, 16>}, {transform_indices = @transform_2, window_bounds = array<i64: 2, 128>}, {transform_indices = @transform_3, window_bounds = array<i64: 2, 128>}, {transform_indices = @transform_4, window_bounds = array<i64: 8, 128>}]} {
    %c0_i32 = arith.constant 0 : i32
    %0 = arith.cmpi eq, %arg1, %c0_i32 : i32
    %1 = arith.extui %0 : i1 to i32
    %c0_i32_0 = arith.constant 0 : i32
    %2 = arith.cmpi ne, %1, %c0_i32_0 : i32
    scf.if %2 {
      %cst_13 = arith.constant 0.000000e+00 : f32
      %20 = vector.broadcast %cst_13 : f32 to vector<1x128xf32>
      %c0_14 = arith.constant 0 : index
      %c0_15 = arith.constant 0 : index
      %21 = vector.load %arg7[%c0_14, %c0_15] : memref<1x128xf32, #tpu.memory_space<vmem>>, vector<1x128xf32>
      tpu.vector_store %arg7[%c0_14, %c0_15], %20 {strides = array<i32>} : memref<1x128xf32, #tpu.memory_space<vmem>>, vector<1x128xf32>,
      %cst_16 = arith.constant 0.000000e+00 : f32
      %22 = vector.broadcast %cst_16 : f32 to vector<8x128xf32>
      %c0_17 = arith.constant 0 : index
      %c0_18 = arith.constant 0 : index
      %23 = vector.load %arg6[%c0_17, %c0_18] : memref<8x128xf32, #tpu.memory_space<vmem>>, vector<8x128xf32>
      tpu.vector_store %arg6[%c0_17, %c0_18], %22 {strides = array<i32>} : memref<8x128xf32, #tpu.memory_space<vmem>>, vector<8x128xf32>,
    } else {
    }
    %c0 = arith.constant 0 : index
    %c0_1 = arith.constant 0 : index
    %3 = vector.load %arg4[%c0, %c0_1] : memref<2x128xf32, #tpu.memory_space<vmem>>, vector<2x128xf32>
    %c0_2 = arith.constant 0 : index
    %c0_3 = arith.constant 0 : index
    %4 = vector.load %arg5[%c0_2, %c0_3] : memref<2x128xf32, #tpu.memory_space<vmem>>, vector<2x128xf32>
    %5 = arith.subf %3, %4 : vector<2x128xf32>
    %c0_4 = arith.constant 0 : index
    %c0_5 = arith.constant 0 : index
    %6 = vector.load %arg7[%c0_4, %c0_5] : memref<1x128xf32, #tpu.memory_space<vmem>>, vector<1x128xf32>
    %7 = arith.mulf %5, %5 : vector<2x128xf32>
    %cst = arith.constant dense<0.000000e+00> : vector<128xf32>
    %8 = vector.multi_reduction <add>, %7, %cst [0] : vector<2x128xf32> to vector<128xf32>
    %9 = vector.shape_cast %8 : vector<128xf32> to vector<1x128xf32>
    %10 = arith.addf %6, %9 : vector<1x128xf32>
    %c0_6 = arith.constant 0 : index
    %c0_7 = arith.constant 0 : index
    %11 = vector.load %arg7[%c0_6, %c0_7] : memref<1x128xf32, #tpu.memory_space<vmem>>, vector<1x128xf32>
    tpu.vector_store %arg7[%c0_6, %c0_7], %10 {strides = array<i32>} : memref<1x128xf32, #tpu.memory_space<vmem>>, vector<1x128xf32>,
    %c0_i32_8 = arith.constant 0 : i32
    %12 = arith.cmpi eq, %arg1, %c0_i32_8 : i32
    %13 = arith.extui %12 : i1 to i32
    %c0_i32_9 = arith.constant 0 : i32
    %14 = arith.cmpi ne, %13, %c0_i32_9 : i32
    scf.if %14 {
      %20 = tpu.iota {dimensions = array<i32: 0>} : vector<8x128xi32>
      %21 = tpu.iota {dimensions = array<i32: 1>} : vector<8x128xi32>
      %c0_13 = arith.constant 0 : index
      %c0_14 = arith.constant 0 : index
      %22 = vector.load %arg7[%c0_13, %c0_14] : memref<1x128xf32, #tpu.memory_space<vmem>>, vector<1x128xf32>
      %23 = vector.shape_cast %22 : vector<1x128xf32> to vector<1x1x128xf32>
      %cst_15 = arith.constant dense<0.000000e+00> : vector<1xf32>
      %24 = vector.multi_reduction <add>, %23, %cst_15 [1, 2] : vector<1x1x128xf32> to vector<1xf32>
      %25 = vector.shape_cast %24 : vector<1xf32> to vector<1x1x1xf32>
      %26 = vector.extract %25[0, 0, 0] : f32 from vector<1x1x1xf32>
      %c0_i32_16 = arith.constant 0 : i32
      %27 = vector.broadcast %c0_i32_16 : i32 to vector<8x128xi32>
      %28 = arith.cmpi eq, %20, %27 : vector<8x128xi32>
      %c2_i32 = arith.constant 2 : i32
      %29 = vector.broadcast %c2_i32 : i32 to vector<8x128xi32>
      %30 = arith.cmpi eq, %21, %29 : vector<8x128xi32>
      %31 = arith.andi %28, %30 : vector<8x128xi1>
      %cst_17 = arith.constant 0.000000e+00 : f32
      %32 = vector.broadcast %26 : f32 to vector<8x128xf32>
      %33 = vector.broadcast %cst_17 : f32 to vector<8x128xf32>
      %34 = arith.select %31, %32, %33 : vector<8x128xi1>, vector<8x128xf32>
      %c0_18 = arith.constant 0 : index
      %c0_19 = arith.constant 0 : index
      %35 = vector.load %arg6[%c0_18, %c0_19] : memref<8x128xf32, #tpu.memory_space<vmem>>, vector<8x128xf32>
      tpu.vector_store %arg6[%c0_18, %c0_19], %34 {strides = array<i32>} : memref<8x128xf32, #tpu.memory_space<vmem>>, vector<8x128xf32>,
    } else {
    }
    %c0_i32_10 = arith.constant 0 : i32
    %15 = arith.cmpi eq, %arg1, %c0_i32_10 : i32
    %c0_i32_11 = arith.constant 0 : i32
    %16 = arith.cmpi eq, %arg0, %c0_i32_11 : i32
    %17 = arith.andi %15, %16 : i1
    %18 = arith.extui %17 : i1 to i32
    %c0_i32_12 = arith.constant 0 : i32
    %19 = arith.cmpi ne, %18, %c0_i32_12 : i32
    scf.if %19 {
      %c0_13 = arith.constant 0 : index
      %c0_14 = arith.constant 0 : index
      %20 = vector.load %arg2[%c0_13, %c0_14] : memref<1x16xf32, #tpu.memory_space<vmem>>, vector<1x16xf32>
      %c0_15 = arith.constant 0 : index
      %c0_16 = arith.constant 0 : index
      %21 = vector.load %arg3[%c0_15, %c0_16] : memref<1x16xf32, #tpu.memory_space<vmem>>, vector<1x16xf32>
      %22 = arith.subf %21, %20 : vector<1x16xf32>
      %23 = arith.mulf %22, %22 : vector<1x16xf32>
      %24 = vector.shape_cast %23 : vector<1x16xf32> to vector<1x1x16xf32>
      %cst_17 = arith.constant dense<0.000000e+00> : vector<1xf32>
      %25 = vector.multi_reduction <add>, %24, %cst_17 [1, 2] : vector<1x1x16xf32> to vector<1xf32>
      %26 = vector.shape_cast %25 : vector<1xf32> to vector<1x1x1xf32>
      %27 = vector.extract %26[0, 0, 0] : f32 from vector<1x1x1xf32>
      %cst_18 = arith.constant 1.600000e+01 : f32
      %28 = arith.divf %27, %cst_18 : f32
      %29 = vector.shape_cast %21 : vector<1x16xf32> to vector<1x1x16xf32>
      %cst_19 = arith.constant dense<0.000000e+00> : vector<1xf32>
      %30 = vector.multi_reduction <add>, %29, %cst_19 [1, 2] : vector<1x1x16xf32> to vector<1xf32>
      %31 = vector.shape_cast %30 : vector<1xf32> to vector<1x1x1xf32>
      %32 = vector.extract %31[0, 0, 0] : f32 from vector<1x1x1xf32>
      %33 = vector.shape_cast %20 : vector<1x16xf32> to vector<1x1x16xf32>
      %cst_20 = arith.constant dense<0.000000e+00> : vector<1xf32>
      %34 = vector.multi_reduction <add>, %33, %cst_20 [1, 2] : vector<1x1x16xf32> to vector<1xf32>
      %35 = vector.shape_cast %34 : vector<1xf32> to vector<1x1x1xf32>
      %36 = vector.extract %35[0, 0, 0] : f32 from vector<1x1x1xf32>
      %37 = arith.subf %32, %36 : f32
      %38 = tpu.iota {dimensions = array<i32: 0>} : vector<8x128xi32>
      %39 = tpu.iota {dimensions = array<i32: 1>} : vector<8x128xi32>
      %c0_21 = arith.constant 0 : index
      %c0_22 = arith.constant 0 : index
      %40 = vector.load %arg6[%c0_21, %c0_22] : memref<8x128xf32, #tpu.memory_space<vmem>>, vector<8x128xf32>
      %c0_i32_23 = arith.constant 0 : i32
      %41 = vector.broadcast %c0_i32_23 : i32 to vector<8x128xi32>
      %42 = arith.cmpi eq, %38, %41 : vector<8x128xi32>
      %c0_i32_24 = arith.constant 0 : i32
      %43 = vector.broadcast %c0_i32_24 : i32 to vector<8x128xi32>
      %44 = arith.cmpi eq, %39, %43 : vector<8x128xi32>
      %45 = arith.andi %42, %44 : vector<8x128xi1>
      %c0_i32_25 = arith.constant 0 : i32
      %46 = vector.broadcast %c0_i32_25 : i32 to vector<8x128xi32>
      %47 = arith.cmpi eq, %38, %46 : vector<8x128xi32>
      %c1_i32 = arith.constant 1 : i32
      %48 = vector.broadcast %c1_i32 : i32 to vector<8x128xi32>
      %49 = arith.cmpi eq, %39, %48 : vector<8x128xi32>
      %50 = arith.andi %47, %49 : vector<8x128xi1>
      %cst_26 = arith.constant 0.000000e+00 : f32
      %51 = vector.broadcast %37 : f32 to vector<8x128xf32>
      %52 = vector.broadcast %cst_26 : f32 to vector<8x128xf32>
      %53 = arith.select %50, %51, %52 : vector<8x128xi1>, vector<8x128xf32>
      %54 = vector.broadcast %28 : f32 to vector<8x128xf32>
      %55 = arith.select %45, %54, %53 : vector<8x128xi1>, vector<8x128xf32>
      %56 = arith.addf %40, %55 : vector<8x128xf32>
      %c0_27 = arith.constant 0 : index
      %c0_28 = arith.constant 0 : index
      %57 = vector.load %arg6[%c0_27, %c0_28] : memref<8x128xf32, #tpu.memory_space<vmem>>, vector<8x128xf32>
      tpu.vector_store %arg6[%c0_27, %c0_28], %56 {strides = array<i32>} : memref<8x128xf32, #tpu.memory_space<vmem>>, vector<8x128xf32>,
    } else {
    }
    return
  }
  func.func @transform_0(%arg0: i32, %arg1: i32) -> (i32, i32) {
    %c0_i32 = arith.constant 0 : i32
    %c0_i32_0 = arith.constant 0 : i32
    %c0_i32_1 = arith.constant 0 : i32
    return %c0_i32, %c0_i32_0 : i32, i32
  }
  func.func @transform_1(%arg0: i32, %arg1: i32) -> (i32, i32) {
    %c0_i32 = arith.constant 0 : i32
    %c0_i32_0 = arith.constant 0 : i32
    %c0_i32_1 = arith.constant 0 : i32
    return %c0_i32, %c0_i32_0 : i32, i32
  }
  func.func @transform_2(%arg0: i32, %arg1: i32) -> (i32, i32) {
    %c1_i32 = arith.constant 1 : i32
    %0 = arith.muli %arg0, %c1_i32 : i32
    %1 = arith.addi %0, %arg1 : i32
    %c0_i32 = arith.constant 0 : i32
    %c0_i32_0 = arith.constant 0 : i32
    return %1, %c0_i32 : i32, i32
  }
  func.func @transform_3(%arg0: i32, %arg1: i32) -> (i32, i32) {
    %c1_i32 = arith.constant 1 : i32
    %0 = arith.muli %arg0, %c1_i32 : i32
    %1 = arith.addi %0, %arg1 : i32
    %c0_i32 = arith.constant 0 : i32
    %c0_i32_0 = arith.constant 0 : i32
    return %1, %c0_i32 : i32, i32
  }
  func.func @transform_4(%arg0: i32, %arg1: i32) -> (i32, i32) {
    %c0_i32 = arith.constant 0 : i32
    %c0_i32_0 = arith.constant 0 : i32
    return %arg0, %c0_i32 : i32, i32
  }
}

</mosaic_0001>

<bundles_post_ra>
// kernel: tpu_custom_call.1
= control target key start
LH: loop header
LB: loop body
LE: loop exit
PB: predicated region body
PF: predicated region fallthrough
CT: control target
= control target key end

     0   :  { %9 = vsyncpa [#allocation4], 0  ;;  %s298_s0 = inlined_call_operand.hbm [shape: f32[1,16], index: 0, kind: input, shape index: {}]   ;;  %s299_s1 = inlined_call_operand.vmem [shape: f32[1,16], index: 1, kind: input, shape index: {}]   ;;  %s300_s2 = inlined_call_operand.vmem [shape: f32[2,128], index: 2, kind: input, shape index: {}]   ;;  %s301_s3 = inlined_call_operand.vmem [shape: f32[2,128], index: 3, kind: input, shape index: {}]   ;;  %s302_s4 = inlined_call_operand.hbm [shape: f32[8,128], index: 4, kind: output, shape index: {}]  }
   0x1   :  { %10 = vsyncpa [#allocation5], 0  ;;  %s252_s15 = smov [#allocation3]  }
   0x2   :  { %s17_s16 = sshll.u32 %s252_s15, 4  ;;  %s18_s16 = int_to_ptr.vmem [resolvable:$true] %s17_s16 }
   0x3   :  { %s216_s17 = scalar_lea.vmem %s18_s16, 16  ;;  %s220_s18 = scalar_lea.vmem %s18_s16, 32 }
   0x4   :  { %p217_p0 = scmp.ne.s32.totalorder %s18_s16, %s216_s17  ;;  %p221_p1 = scmp.lt.s32.totalorder %s18_s16, %s18_s16 }
   0x5   :  { %p222_p2 = scmp.lt.s32.totalorder %s220_s18, %s216_s17 }
   0x7   :  { %p223_p3 = por %p222_p2, %p221_p1 }
   0x9   :  { %p224_p4 = pnand %p223_p3, %p217_p0 }
   0xb   :  { %227 = shalt.err (!%p224_p4)
}
   0xc   :  { %20 = dma.hbm_to_vmem [thread:$0]  %s298_s0, 16, %s18_s16, [#allocation4]  }
   0xd   :  { %248 = dma.done.wait [#allocation4], 16  }
   0xe   :  { %249 = vsyncadd [#allocation4], 4294967280  ;;  %v253_v0 = vmov 0.0   ;;  %vm119_vm0 = vcmask 122880   ;;  %v116_v1 = vld [vmem:[%s299_s1] sm:$0x1]  ;;  %v88_v51 = vlaneseq }
   0xf   :  { %68 = vst [vmem:[#allocation2] sm:$0x1] %v253_v0  ;;  %v115_v2 = vld [vmem:[#allocation3] sm:$0x1]  ;;  %v70_v3 = vld [vmem:[%s300_s2] sm:$0x3] }
  0x10   :  { %v133_v4 = vsel %vm119_vm0, %v116_v1, 0.0  ;;  %v71_v5 = vld [vmem:[%s301_s3] sm:$0x3]  ;;  %v143_v7 = vsel %vm119_vm0, %v115_v2, 0.0  ;;  %vm75_vm1 = vcmask 1041408   ;;  %v117_v18 = vsub.f32 %v116_v1, %v115_v2  ;;  %s254_s29 = smov [#allocation6]  }
  0x11   :  { %134 = vadd.xlane.f32.xlu1 %v133_v4  ;;  %v72_v6 = vsub.f32 %v70_v3, %v71_v5  ;;  %vm93_vm2 = vcmask 1040384   ;;  %v89_v52 = vshrl.u32 %v88_v51, 7  ;;  %v91_v53 = vand.u32 127, %v88_v51  ;;  %s176_s30 = sshll.u32 %s254_s29, 4  ;;  %s177_s30 = int_to_ptr.vmem [resolvable:$true] %s176_s30 }
  0x12   :  { %v118_v19 = vmul.f32 %v117_v18, %v117_v18  ;;  %s228_s5 = scalar_lea.vmem %s177_s30, 128  ;;  %p233_p6 = scmp.lt.s32.totalorder %s177_s30, %s177_s30 }
  0x13   :  { %v74_v8 = vmul.f32 %v72_v6, %v72_v6  ;;  %vm104_vm3 = vcmp.eq.s32.totalorder %v89_v52, 0  ;;  %vm105_vm4 = vcmp.eq.s32.totalorder %v91_v53, 2  ;;  %vm162_vm5 = vcmp.eq.s32.totalorder %v91_v53, 1  ;;  %p229_p5 = scmp.ne.s32.totalorder %s177_s30, %s228_s5  ;;  %p234_p7 = scmp.lt.s32.totalorder %s228_s5, %s228_s5 }
  0x14   :  { %v120_v22 = vsel %vm119_vm0, %v118_v19, 0.0  ;;  %vm160_vm6 = vcmp.eq.s32.totalorder %v91_v53, 0  ;;  %vm106_vm7 = vmand %vm104_vm3, %vm105_vm4 }
  0x15   :  { %144 = vadd.xlane.f32.xlu1 %v143_v7  ;;  %v76_v9 = vsel %vm75_vm1, %v74_v8, 0.0  ;;  %vm163_vm8 = vmand %vm104_vm3, %vm162_vm5  ;;  %p235_p8 = por %p234_p7, %p233_p6 }
  0x16   :  { %v77_v10 = vrot.slane %v76_v9, 4  ;;  %v73_v15 = vld [vmem:[#allocation2] sm:$0x1]  ;;  %vm161_vm9 = vmand %vm104_vm3, %vm160_vm6 }
  0x17   :  { %p236_p9 = pnand %p235_p8, %p229_p5 }
  0x18   :  { %v78_v11 = vadd.f32 %v77_v10, %v76_v9 }
  0x1a   :  { %v79_v12 = vrot.slane %v78_v11, 2 }
  0x1c   :  { %v80_v13 = vadd.f32 %v79_v12, %v78_v11 }
  0x1e   :  { %v81_v14 = vrot.slane %v80_v13, 1 }
  0x20   :  { %v82_v16 = vadd.f32 %v81_v14, %v80_v13 }
  0x22   :  { %v83_v17 = vadd.f32 %v82_v16, %v73_v15 }
  0x24   :  { %84 = vst [vmem:[#allocation2] sm:$0x1] %v83_v17 }
  0x2b   :  { %v92_v20 = vld [vmem:[#allocation2] sm:$0x1] }
  0x2c   :  { %v94_v21 = vsel %vm93_vm2, %v92_v20, 0.0 }
  0x2d   :  { %95 = vadd.xlane.f32.xlu0 %v94_v21 }
  0x31   :  { %121 = vadd.xlane.f32.xlu0 %v120_v22 }
  0x9a   :  { %v135_v23 = vpop.xlane.xlu1 %134 }
  0x9b   :  { %v136_v25 = vrot.slane %v135_v23, 4 }
  0x9d   :  { %v137_v27 = vadd.f32 %v136_v25, %v135_v23 }
  0x9e   :  { %v145_v24 = vpop.xlane.xlu1 %144 }
  0x9f   :  { %v146_v26 = vrot.slane %v145_v24, 4  ;;  %v138_v32 = vrot.slane %v137_v27, 2 }
  0xa1   :  { %v147_v29 = vadd.f32 %v146_v26, %v145_v24  ;;  %v139_v39 = vadd.f32 %v138_v32, %v137_v27 }
  0xa3   :  { %v148_v34 = vrot.slane %v147_v29, 2  ;;  %v140_v45 = vrot.slane %v139_v39, 1 }
  0xa5   :  { %v149_v40 = vadd.f32 %v148_v34, %v147_v29  ;;  %v141_v49 = vadd.f32 %v140_v45, %v139_v39 }
  0xa7   :  { %v150_v47 = vrot.slane %v149_v40, 1 }
  0xa9   :  { %v151_v50 = vadd.f32 %v150_v47, %v149_v40 }
  0xb6   :  { %v96_v28 = vpop.xlane.xlu0 %95 }
  0xb7   :  { %v97_v30 = vrot.slane %v96_v28, 4 }
  0xb9   :  { %v98_v31 = vadd.f32 %v97_v30, %v96_v28 }
  0xba   :  { %v122_v33 = vpop.xlane.xlu0 %121 }
  0xbb   :  { %v99_v35 = vrot.slane %v98_v31, 2  ;;  %v123_v36 = vrot.slane %v122_v33, 4 }
  0xbd   :  { %v124_v37 = vadd.f32 %v123_v36, %v122_v33  ;;  %v100_v38 = vadd.f32 %v99_v35, %v98_v31 }
  0xbf   :  { %v125_v41 = vrot.slane %v124_v37, 2  ;;  %v101_v42 = vrot.slane %v100_v38, 1 }
  0xc1   :  { %v126_v43 = vadd.f32 %v125_v41, %v124_v37  ;;  %v102_v44 = vadd.f32 %v101_v42, %v100_v38 }
  0xc3   :  { %197 = vpush %v102_v44  ;;  %v127_v46 = vrot.slane %v126_v43, 1 }
  0xc5   :  { %v128_v48 = vadd.f32 %v127_v46, %v126_v43 }
  0xc7   :  { %199 = vpush %v128_v48 }
  0xc8   :  { %201 = vpush %v141_v49 }
  0xc9   :  { %203 = vpush %v151_v50 }
  0xf4   :  { %s198_s0 = spop %197 }
  0xf5   :  { %v107_v54 = vstv %s198_s0 }
  0xf6   :  { %v108_v58 = vsel %vm106_vm7, %v107_v54, 0.0 }
  0xf8   :  { %s200_s1 = spop %199 }
  0xf9   :  { %s132_s2 = smul.f32 0.0625, %s200_s1  ;;  %s202_s3 = spop %201 }
  0xfa   :  { %s204_s27 = spop %203 }
  0xfb   :  { %s153_s28 = ssub.f32 %s202_s3, %s204_s27  ;;  %v166_v55 = vstv %s132_s2 }
  0xfd   :  { %v164_v56 = vstv %s153_s28 }
  0xfe   :  { %v165_v57 = vsel %vm163_vm8, %v164_v56, 0.0 }
  0xff   :  { %v167_v59 = vsel %vm161_vm9, %v166_v55, %v165_v57 }
 0x100   :  { %v168_v60 = vadd.f32 %v167_v59, %v108_v58 }
 0x102   :  { %169 = vst [vmem:[#allocation6] sm:$0xff] %v168_v60 }
 0x103   :  { %239 = shalt.err (!%p236_p9)
}
 0x104   :  { %179 = dma.vmem_to_hbm [thread:$0]  %s177_s30, 128, %s302_s4, [#allocation5]  }
 0x105   :  { %250 = dma.done.wait [#allocation5], 128  }
 0x106   :  { %251 = vsyncadd [#allocation5], 4294967168 }
 0x107   :  { %183 = vsyncpa [#allocation4], 1 }
 0x108   :  { %184 = vsyncpa [#allocation5], 1 }

</bundles_post_ra>
